<compile_context>
chip_gen: v5e
topology: v5e:2x2
jax: 0.10.0
libtpu: 0.0.40
codegen_flags: <defaults>
</compile_context>

<pallas_src>
import jax
import jax.numpy as jnp
from jax.experimental import pallas as pl
from jax.experimental.pallas import tpu as pltpu


# ---------------------------------------------------------------------------
# Pallas kernel: fused (4C -> 2C) reduction matmul + LayerNorm(2C)
# ---------------------------------------------------------------------------

def patch_merging_kernel(x_ref, w_ref, g_ref, b_ref, o_ref):
    # x_ref: (TM, 4C) tile of merged-patch rows (lane-dense)
    # w_ref: (4C, 2C) reduction weight (== torch reduction.weight.T)
    # g_ref, b_ref: (1, 2C) LayerNorm gamma / beta
    x = x_ref[...]
    y = jnp.dot(x, w_ref[...], preferred_element_type=jnp.float32)     # MXU
    mu = jnp.mean(y, axis=-1, keepdims=True)
    var = jnp.mean((y - mu) ** 2, axis=-1, keepdims=True)
    inv = jax.lax.rsqrt(var + 1e-5)                                     # eps of nn.LayerNorm
    o_ref[...] = (y - mu) * inv * g_ref[0] + b_ref[0]


# ---------------------------------------------------------------------------
# Wrapper
# ---------------------------------------------------------------------------

def patch_merging_pallas(x, w_red, ln_w, ln_b, H, W):
    """x: (B, H*W, C) float32. Returns (B, H/2*W/2, 2C)."""
    B, L, C = x.shape
    assert L == H * W, "input feature has wrong size"
    assert H % 2 == 0 and W % 2 == 0, "H, W must be even"
    Lout = (H // 2) * (W // 2)
    M, C4, C2 = B * Lout, 4 * C, 2 * C

    # 2x2 patch gather (layout plumbing done in the wrapper).  Channel-block
    # order matches torch.cat([x0, x1, x2, x3], -1):
    #   block0 = (h even, w even), block1 = (h odd, w even),
    #   block2 = (h even, w odd),  block3 = (h odd, w odd)
    xr = x.reshape(B, H // 2, 2, W // 2, 2, C)          # (B, hb, hp, wb, wp, C)
    xr = jnp.transpose(xr, (0, 1, 3, 4, 2, 5))          # (B, hb, wb, wp, hp, C)
    x2d = xr.reshape(M, C4)                             # lane-dense slab for the MXU

    # Row tiling: at most 2 independent grid steps (so v7x megacore can split),
    # each a wide (TM, 4C) @ (4C, 2C) matmul.  TM multiple of 8 or full M.
    if M % 2 == 0 and (M // 2) % 8 == 0:
        tm = M // 2
    else:
        tm = M
    grid = (M // tm,)

    out2d = pl.pallas_call(
        patch_merging_kernel,
        out_shape=jax.ShapeDtypeStruct((M, C2), jnp.float32),
        grid=grid,
        in_specs=[
            pl.BlockSpec((tm, C4), lambda i: (i, 0)),    # merged-patch rows
            pl.BlockSpec((C4, C2), lambda i: (0, 0)),    # reduction weight
            pl.BlockSpec((1, C2), lambda i: (0, 0)),     # LN gamma
            pl.BlockSpec((1, C2), lambda i: (0, 0)),     # LN beta
        ],
        out_specs=pl.BlockSpec((tm, C2), lambda i: (i, 0)),
        compiler_params=pltpu.CompilerParams(dimension_semantics=("parallel",)),
    )(x2d, w_red, ln_w.reshape(1, C2), ln_b.reshape(1, C2))

    return out2d.reshape(B, Lout, C2)


# ---------------------------------------------------------------------------
# Pure-JAX reference (mirrors the PyTorch forward) for a correctness check
# ---------------------------------------------------------------------------

def patch_merging_ref(x, w_red, ln_w, ln_b, H, W):
    B, L, C = x.shape
    xv = x.reshape(B, H, W, C)
    x0 = xv[:, 0::2, 0::2, :]
    x1 = xv[:, 1::2, 0::2, :]
    x2 = xv[:, 0::2, 1::2, :]
    x3 = xv[:, 1::2, 1::2, :]
    xc = jnp.concatenate([x0, x1, x2, x3], axis=-1).reshape(B, -1, 4 * C)
    y = xc @ w_red
    mu = jnp.mean(y, axis=-1, keepdims=True)
    var = jnp.mean((y - mu) ** 2, axis=-1, keepdims=True)
    return (y - mu) * jax.lax.rsqrt(var + 1e-5) * ln_w + ln_b


# ---------------------------------------------------------------------------
# main
# ---------------------------------------------------------------------------

if __name__ == "__main__":
    # PatchMerging config: input_resolution=(16, 16), dim=64, batch=2
    # -> x: (2, 256, 64), output: (2, 64, 128)
    B, H, W, C = 2, 16, 16, 64
    L = H * W

    key = jax.random.PRNGKey(0)
    kx, kw, kg, kb = jax.random.split(key, 4)
    x = jax.random.normal(kx, (B, L, C), dtype=jnp.float32)
    w_red = (0.02 * jax.random.normal(kw, (4 * C, 2 * C))).astype(jnp.float32)
    ln_w = (1.0 + 0.02 * jax.random.normal(kg, (2 * C,))).astype(jnp.float32)
    ln_b = (0.02 * jax.random.normal(kb, (2 * C,))).astype(jnp.float32)

    out = patch_merging_pallas(x, w_red, ln_w, ln_b, H, W)
    out = jax.block_until_ready(out)

    ref = patch_merging_ref(x, w_red, ln_w, ln_b, H, W)
    assert out.shape == (B, (H // 2) * (W // 2), 2 * C)
    assert bool(jnp.all(jnp.isfinite(out)))
    assert bool(jnp.allclose(out, ref, atol=2e-4, rtol=2e-4)), \
        float(jnp.max(jnp.abs(out - ref)))
    print("KERNEL_OK")
</pallas_src>

<mosaic_0001>
module attributes {stable_mosaic.version = 11 : i64} {
  func.func @patch_merging_kernel(%arg0: i32, %arg1: memref<64x256xf32, #tpu.memory_space<vmem>>, %arg2: memref<256x128xf32, #tpu.memory_space<vmem>>, %arg3: memref<1x128xf32, #tpu.memory_space<vmem>>, %arg4: memref<1x128xf32, #tpu.memory_space<vmem>>, %arg5: memref<64x128xf32, #tpu.memory_space<vmem>>) attributes {dimension_semantics = [#tpu.dimension_semantics<parallel>], iteration_bounds = array<i64: 2>, scalar_prefetch = 0 : i64, scratch_operands = 0 : i64, tpu.core_type = #tpu.core_type<tc>, window_params = [{transform_indices = @transform_0, window_bounds = array<i64: 64, 256>}, {pipeline_mode = #tpu.pipeline_mode<synchronous>, transform_indices = @transform_1, window_bounds = array<i64: 256, 128>}, {pipeline_mode = #tpu.pipeline_mode<synchronous>, transform_indices = @transform_2, window_bounds = array<i64: 1, 128>}, {pipeline_mode = #tpu.pipeline_mode<synchronous>, transform_indices = @transform_3, window_bounds = array<i64: 1, 128>}, {transform_indices = @transform_4, window_bounds = array<i64: 64, 128>}]} {
    %c0 = arith.constant 0 : index
    %c0_0 = arith.constant 0 : index
    %0 = vector.load %arg1[%c0, %c0_0] : memref<64x256xf32, #tpu.memory_space<vmem>>, vector<64x256xf32>
    %c0_1 = arith.constant 0 : index
    %c0_2 = arith.constant 0 : index
    %1 = vector.load %arg2[%c0_1, %c0_2] : memref<256x128xf32, #tpu.memory_space<vmem>>, vector<256x128xf32>
    %cst = arith.constant dense<0.000000e+00> : vector<64x128xf32>
    %2 = tpu.matmul %0, %1, %cst {dimension_numbers = #tpu.dot_dimension_numbers<[1], [0], [0], [1], [0, 0, 1, 1], [], []>} : vector<64x256xf32>, vector<256x128xf32>, vector<64x128xf32> -> vector<64x128xf32>
    %cst_3 = arith.constant dense<0.000000e+00> : vector<64xf32>
    %3 = vector.multi_reduction <add>, %2, %cst_3 [1] : vector<64x128xf32> to vector<64xf32>
    %4 = vector.shape_cast %3 : vector<64xf32> to vector<64x1xf32>
    %cst_4 = arith.constant 1.280000e+02 : f32
    %5 = vector.broadcast %cst_4 : f32 to vector<64x1xf32>
    %6 = arith.divf %4, %5 : vector<64x1xf32>
    %7 = vector.broadcast %6 : vector<64x1xf32> to vector<64x128xf32>
    %8 = arith.subf %2, %7 : vector<64x128xf32>
    %9 = arith.mulf %8, %8 : vector<64x128xf32>
    %cst_5 = arith.constant dense<0.000000e+00> : vector<64xf32>
    %10 = vector.multi_reduction <add>, %9, %cst_5 [1] : vector<64x128xf32> to vector<64xf32>
    %11 = vector.shape_cast %10 : vector<64xf32> to vector<64x1xf32>
    %cst_6 = arith.constant 1.280000e+02 : f32
    %12 = vector.broadcast %cst_6 : f32 to vector<64x1xf32>
    %13 = arith.divf %11, %12 : vector<64x1xf32>
    %cst_7 = arith.constant 9.99999974E-6 : f32
    %14 = vector.broadcast %cst_7 : f32 to vector<64x1xf32>
    %15 = arith.addf %13, %14 : vector<64x1xf32>
    %16 = math.rsqrt %15 : vector<64x1xf32>
    %17 = vector.broadcast %6 : vector<64x1xf32> to vector<64x128xf32>
    %18 = arith.subf %2, %17 : vector<64x128xf32>
    %19 = vector.broadcast %16 : vector<64x1xf32> to vector<64x128xf32>
    %20 = arith.mulf %18, %19 : vector<64x128xf32>
    %c0_8 = arith.constant 0 : index
    %c0_9 = arith.constant 0 : index
    %21 = vector.load %arg3[%c0_8, %c0_9] : memref<1x128xf32, #tpu.memory_space<vmem>>, vector<1x128xf32>
    %22 = vector.shape_cast %21 : vector<1x128xf32> to vector<128xf32>
    %23 = vector.shape_cast %22 : vector<128xf32> to vector<1x128xf32>
    %24 = vector.broadcast %23 : vector<1x128xf32> to vector<64x128xf32>
    %25 = arith.mulf %20, %24 : vector<64x128xf32>
    %c0_10 = arith.constant 0 : index
    %c0_11 = arith.constant 0 : index
    %26 = vector.load %arg4[%c0_10, %c0_11] : memref<1x128xf32, #tpu.memory_space<vmem>>, vector<1x128xf32>
    %27 = vector.shape_cast %26 : vector<1x128xf32> to vector<128xf32>
    %28 = vector.shape_cast %27 : vector<128xf32> to vector<1x128xf32>
    %29 = vector.broadcast %28 : vector<1x128xf32> to vector<64x128xf32>
    %30 = arith.addf %25, %29 : vector<64x128xf32>
    %c0_12 = arith.constant 0 : index
    %c0_13 = arith.constant 0 : index
    %31 = vector.load %arg5[%c0_12, %c0_13] : memref<64x128xf32, #tpu.memory_space<vmem>>, vector<64x128xf32>
    tpu.vector_store %arg5[%c0_12, %c0_13], %30 {strides = array<i32>} : memref<64x128xf32, #tpu.memory_space<vmem>>, vector<64x128xf32>,
    return
  }
  func.func @transform_0(%arg0: i32) -> (i32, i32) {
    %c0_i32 = arith.constant 0 : i32
    %c0_i32_0 = arith.constant 0 : i32
    return %arg0, %c0_i32 : i32, i32
  }
  func.func @transform_1(%arg0: i32) -> (i32, i32) {
    %c0_i32 = arith.constant 0 : i32
    %c0_i32_0 = arith.constant 0 : i32
    %c0_i32_1 = arith.constant 0 : i32
    return %c0_i32, %c0_i32_0 : i32, i32
  }
  func.func @transform_2(%arg0: i32) -> (i32, i32) {
    %c0_i32 = arith.constant 0 : i32
    %c0_i32_0 = arith.constant 0 : i32
    %c0_i32_1 = arith.constant 0 : i32
    return %c0_i32, %c0_i32_0 : i32, i32
  }
  func.func @transform_3(%arg0: i32) -> (i32, i32) {
    %c0_i32 = arith.constant 0 : i32
    %c0_i32_0 = arith.constant 0 : i32
    %c0_i32_1 = arith.constant 0 : i32
    return %c0_i32, %c0_i32_0 : i32, i32
  }
  func.func @transform_4(%arg0: i32) -> (i32, i32) {
    %c0_i32 = arith.constant 0 : i32
    %c0_i32_0 = arith.constant 0 : i32
    return %arg0, %c0_i32 : i32, i32
  }
}

</mosaic_0001>

<bundles_post_ra>
// kernel: tpu_custom_call.1
= control target key start
LH: loop header
LB: loop body
LE: loop exit
PB: predicated region body
PF: predicated region fallthrough
CT: control target
= control target key end

     0   :  { %9 = vsyncpa [#allocation3], 0  ;;  %s1231_s0 = inlined_call_operand.hbm [shape: f32[128,256], index: 0, kind: input, shape index: {}]   ;;  %s1232_s1 = inlined_call_operand.hbm [shape: f32[256,128], index: 1, kind: input, shape index: {}]   ;;  %s1233_s2 = inlined_call_operand.vmem [shape: f32[1,128], index: 2, kind: input, shape index: {}]   ;;  %s1234_s3 = inlined_call_operand.vmem [shape: f32[1,128], index: 3, kind: input, shape index: {}]   ;;  %s1235_s4 = inlined_call_operand.hbm [shape: f32[128,128], index: 4, kind: output, shape index: {}]  }
   0x1   :  { %11 = vsyncpa [#allocation3 + $0x1], 0 }
   0x2   :  { %12 = vsyncpa [#allocation6], 0 }
   0x3   :  { %13 = vsyncpa [#allocation4], 0 }
   0x4   :  { %15 = vsyncpa [#allocation4 + $0x1], 0  ;;  %s967_s15 = smov 0   ;;  %s969_s16 = smov 0  }
   0x5   :  { %s971_s17 = smov 0   ;;  %s973_s18 = smov 0  }
   0x6 LB: > { %s988_s19 = sadd.s32 4294967295, %s932_s18   ;;  %s666_s20 = sadd.s32 4294967294, %s932_s18   ;;  %s932_s18 = sphi %s973_s18, %s1245_s18   ;;  %s928_s17 = sphi %s971_s17, %s1244_s17   ;;  %s924_s16 = sphi %s969_s16, %s1243_s16   ;;  %s920_s15 = sphi %s967_s15, %s1242_s15  }
   0x7   : > { %p41_p0 = scmp.ne.s32.totalorder %s924_s16, %s920_s15  ;;  %p42_p1 = scmp.eq.s32.totalorder %s988_s19, 0 }
   0x8   : > { %p128_p2 = scmp.eq.s32.totalorder %s988_s19, 1  ;;  %p134_p3 = scmp.eq.s32.totalorder %s666_s20, 1 }
   0x9   : > { %p997_p4 = por %p42_p1, %p41_p0  ;;  %p667_p5 = scmp.ge.s32.totalorder %s932_s18, 1 }
   0xa   : > { %p1002_p6 = por %p134_p3, %p41_p0  ;;  %p141_p7 = scmp.lt.s32.totalorder %s932_s18, 3 }
   0xb   : > { %s152_s25 = sshll.u32 %s1232_s1, 4  ;;  %s934_s27 = smov [#allocation5]   ;;  %s153_s25 = int_to_ptr.hbm [resolvable:$true] %s152_s25 }
   0xc   : > { %p1010_p8 = pnand %p667_p5, %p141_p7  ;;  %s154_s28 = sshll.u32 %s934_s27, 4  ;;  %s155_s28 = int_to_ptr.vmem [resolvable:$true] %s154_s28 }
   0xd   : > { %s1020_s29 = sadd.s32 1, %s932_s18   ;;  %s935_s30 = smov 128  }
   0xe   : > { %p726_p9 = pneg %p1010_p8  ;;  %s936_s5 = smov 8  }
   0xf   : > { %s25_s6 = ssub.s32 %s932_s18, %s1020_s29  ;;  %s28_s7 = sadd.s32 1, %s928_s17 }
  0x10   : > { %p727_p10 = pnand %p726_p9, %p42_p1  ;;  %p26_p12 = scmp.eq.s32.totalorder %s25_s6, 0 }
  0x11   : > { %p35_p13 = scmp.ne.s32.totalorder %s928_s17, %s924_s16  ;;  %p36_p0 = scmp.eq.s32.totalorder %s932_s18, 0 }
  0x12   : > { %729 = dma.hbm_to_vmem [thread:$0]  (!%p727_p10), %s153_s25, 4096, %s155_s28, [#allocation6], %s935_s30, %s935_s30, %s936_s5  }
  0x13   : > { %p739_p3 = scmp.lt.s32.totalorder %s932_s18, 2  ;;  %p37_p5 = por %p36_p0, %p35_p13 }
  0x14   : > { %s1030_s8 = scalar_select %p26_p12, %s928_s17, %s28_s7  }
  0x15   : > { %p1034_p7 = por %p128_p2, %p35_p13  ;;  %s174_s10 = sand.u32 1, %s928_s17  }
  0x16   : > { %s684_s11 = sshll.u32 %s932_s18, 7  ;;  %s670_s12 = sshll.u32 %s174_s10, 7 }
  0x17   : > { %s184_s20 = scalar_lea.hbm %s1231_s0, %s684_s11  ;;  %s178_s24 = scalar_lea.vmem [#allocation2], %s670_s12 }
  0x18   : > { %s185_s23 = sshll.u32 %s184_s20, 4  ;;  %s187_s25 = sshll.u32 %s178_s24, 4  ;;  %s186_s23 = int_to_ptr.hbm [resolvable:$true] %s185_s23  ;;  %s188_s25 = int_to_ptr.vmem [resolvable:$true] %s187_s25 }
  0x19   : > { %p1045_p9 = pnand %p739_p3, %p37_p5  ;;  %s175_s28 = scalar_lea.sflag [#allocation3], %s174_s10 }
  0x1a   : > { %s832_s30 = sshra.s32 %s186_s23, 4  ;;  %s839_s11 = scalar_lea.hbm %s1231_s0, 256  ;;  %s833_s30 = int_to_ptr.hbm [resolvable:$true] %s832_s30 }
  0x1b   : > { %s834_s5 = scalar_lea.hbm %s833_s30, 128  ;;  %p836_p10 = pneg %p1045_p9 }
  0x1c   : > { %p835_p2 = scmp.ne.s32.totalorder %s833_s30, %s834_s5  ;;  %p840_p0 = scmp.lt.s32.totalorder %s833_s30, %s1231_s0 }
  0x1d   : > { %p841_p3 = scmp.lt.s32.totalorder %s839_s11, %s834_s5 }
  0x1e   : > { %p837_p12 = pnand %p836_p10, %p835_p2 }
  0x1f   : > { %p842_p5 = por %p841_p3, %p840_p0 }
  0x20   : > { %p838_p13 = pneg %p837_p12 }
  0x22   : > { %p843_p11 = pnand %p842_p5, %p838_p13 }
  0x24   : > { %846 = shalt.err (!%p843_p11)
}
  0x25   : > { %s937_s10 = smov 256   ;;  %s938_s14 = smov 16  }
  0x26   : > { %733 = dma.hbm_to_vmem [thread:$0]  (!%p1045_p9), %s186_s23, 2048, %s188_s25, %s175_s28, %s937_s10, %s937_s10, %s938_s14  }
  0x27   : > { %199 = sbr.rel (%p1010_p8) target bundleno = 512 (0x200), region = 36  ;;  %s1062_s20 = sand.u32 (!%p1010_p8), 1, %s924_s16  }
  0x28   : > { %s675_s24 = sshll.u32 (!%p1010_p8), %s1062_s20, 7  ;;  %s202_s30 = scalar_lea.sflag (!%p1010_p8), [#allocation3], %s1062_s20 }
  0x29   : > { %s1066_s5 = scalar_lea.vmem (!%p1010_p8), [#allocation2], %s675_s24 }
  0x2c   : > { %907 = dma.done.wait (%p997_p4), %s202_s30, 2048  }
  0x2d   : > { %909 = vsyncadd (%p997_p4), %s202_s30, 4294965248 }
  0x2e   : > { %911 = dma.done.wait (%p42_p1), [#allocation6], 4096  }
  0x2f   : > { %913 = vsyncadd (%p42_p1), [#allocation6], 4294963200  ;;  %v269_v0 = vld [vmem:[#allocation5 + $0x78] sm:$0xff]  ;;  %v268_v2 = vld [vmem:[#allocation5 + $0x70] sm:$0xff]  ;;  %s677_s23 = sshll.u32 %s1062_s20, 6  ;;  %s685_s6 = sshll.u32 %s988_s19, 6 }
  0x30   : > { %v285_v1 = vld [vmem:[#allocation5 + $0xf8] sm:$0xff]  ;;  %286 = vmatpush.msra.mxu0 %v269_v0  ;;  %686 = vmatpush.msra.mxu2 %v269_v0  ;;  %v284_v3 = vld [vmem:[#allocation5 + $0xf0] sm:$0xff]  ;;  %v267_v4 = vld [vmem:[#allocation5 + $0x68] sm:$0xff]  ;;  %s1156_s28 = scalar_lea.vmem [#allocation7], %s677_s23  ;;  %s579_s12 = scalar_lea.hbm %s1235_s4, %s685_s6 }
  0x31   : > { %327 = vmatpush.msra.mxu1 %v285_v1  ;;  %702 = vmatpush.msra.mxu3 %v285_v1  ;;  %v283_v5 = vld [vmem:[#allocation5 + $0xe8] sm:$0xff]  ;;  %v266_v6 = vld [vmem:[#allocation5 + $0x60] sm:$0xff]  ;;  %v265_v8 = vld [vmem:[#allocation5 + $0x58] sm:$0xff]  ;;  %s580_s19 = sshll.u32 %s1156_s28, 4  ;;  %s582_s13 = sshll.u32 %s579_s12, 4  ;;  %s581_s19 = int_to_ptr.vmem [resolvable:$true] %s580_s19  ;;  %s583_s13 = int_to_ptr.hbm [resolvable:$true] %s582_s13 }
  0x32   : > { %287 = vmatpush.msra.mxu0 %v268_v2  ;;  %687 = vmatpush.msra.mxu2 %v268_v2  ;;  %v282_v7 = vld [vmem:[#allocation5 + $0xe0] sm:$0xff]  ;;  %v281_v9 = vld [vmem:[#allocation5 + $0xd8] sm:$0xff]  ;;  %v264_v10 = vld [vmem:[#allocation5 + $0x50] sm:$0xff]  ;;  %s568_s10 = scalar_lea.sflag [#allocation4], %s1062_s20  ;;  %s876_s14 = sshra.s32 %s583_s13, 4  ;;  %s877_s14 = int_to_ptr.hbm [resolvable:$true] %s876_s14 }
  0x33   : > { %328 = vmatpush.msra.mxu1 %v284_v3  ;;  %703 = vmatpush.msra.mxu3 %v284_v3  ;;  %v280_v11 = vld [vmem:[#allocation5 + $0xd0] sm:$0xff]  ;;  %v263_v12 = vld [vmem:[#allocation5 + $0x48] sm:$0xff]  ;;  %v262_v14 = vld [vmem:[#allocation5 + $0x40] sm:$0xff]  ;;  %s878_s24 = scalar_lea.hbm %s877_s14, 64  ;;  %s882_s21 = scalar_lea.hbm %s1235_s4, 128 }
  0x34   : > { %288 = vmatpush.msra.mxu0 %v267_v4  ;;  %688 = vmatpush.msra.mxu2 %v267_v4  ;;  %v279_v13 = vld [vmem:[#allocation5 + $0xc8] sm:$0xff]  ;;  %v278_v15 = vld [vmem:[#allocation5 + $0xc0] sm:$0xff]  ;;  %v261_v16 = vld [vmem:[#allocation5 + $0x38] sm:$0xff]  ;;  %p879_p1 = scmp.ne.s32.totalorder %s877_s14, %s878_s24  ;;  %p883_p11 = scmp.lt.s32.totalorder %s877_s14, %s1235_s4 }
  0x35   : > { %329 = vmatpush.msra.mxu1 %v283_v5  ;;  %704 = vmatpush.msra.mxu3 %v283_v5  ;;  %v277_v17 = vld [vmem:[#allocation5 + $0xb8] sm:$0xff]  ;;  %v260_v18 = vld [vmem:[#allocation5 + $0x30] sm:$0xff]  ;;  %v259_v20 = vld [vmem:[#allocation5 + $0x28] sm:$0xff]  ;;  %p884_p9 = scmp.lt.s32.totalorder %s882_s21, %s878_s24 }
  0x36   : > { %289 = vmatpush.msra.mxu0 %v266_v6  ;;  %689 = vmatpush.msra.mxu2 %v266_v6  ;;  %v276_v19 = vld [vmem:[#allocation5 + $0xb0] sm:$0xff]  ;;  %v275_v21 = vld [vmem:[#allocation5 + $0xa8] sm:$0xff]  ;;  %v258_v22 = vld [vmem:[#allocation5 + $0x20] sm:$0xff]  ;;  %p880_p4 = pnand %p879_p1, %p1034_p7 }
  0x37   : > { %330 = vmatpush.msra.mxu1 %v282_v7  ;;  %705 = vmatpush.msra.mxu3 %v282_v7  ;;  %v274_v23 = vld [vmem:[#allocation5 + $0xa0] sm:$0xff]  ;;  %v257_v24 = vld [vmem:[#allocation5 + $0x18] sm:$0xff]  ;;  %v256_v26 = vld [vmem:[#allocation5 + $0x10] sm:$0xff]  ;;  %p885_p2 = por %p884_p9, %p883_p11 }
  0x38   : > { %290 = vmatpush.msra.mxu0 %v265_v8  ;;  %690 = vmatpush.msra.mxu2 %v265_v8  ;;  %v273_v25 = vld [vmem:[#allocation5 + $0x98] sm:$0xff]  ;;  %v272_v27 = vld [vmem:[#allocation5 + $0x90] sm:$0xff]  ;;  %v255_v28 = vld [vmem:[#allocation5 + $0x8] sm:$0xff]  ;;  %v939_v8 = vmov 128.0   ;;  %p881_p8 = pneg %p880_p4 }
  0x39   : > { %331 = vmatpush.msra.mxu1 %v281_v9  ;;  %706 = vmatpush.msra.mxu3 %v281_v9  ;;  %v271_v29 = vld [vmem:[#allocation5 + $0x88] sm:$0xff]  ;;  %v254_v30 = vld [vmem:[#allocation5] sm:$0xff]  ;;  %v240_v36 = vld [vmem:[%s1066_s5 + $0x10] sm:$0xff]  ;;  %784 = vrcp.f32 %v939_v8 }
  0x3a   : > { %291 = vmatpush.msra.mxu0 %v264_v10  ;;  %691 = vmatpush.msra.mxu2 %v264_v10  ;;  %v270_v31 = vld [vmem:[#allocation5 + $0x80] sm:$0xff]  ;;  %v239_v34 = vld [vmem:[%s1066_s5 + $0x8] sm:$0xff]  ;;  %v248_v37 = vld [vmem:[%s1066_s5 + $0x50] sm:$0xff]  ;;  %p886_p10 = pnand %p885_p2, %p881_p8 }
  0x3b   : > { %332 = vmatpush.msra.mxu1 %v280_v11  ;;  %707 = vmatpush.msra.mxu3 %v280_v11  ;;  %v238_v32 = vld [vmem:[%s1066_s5] sm:$0xff]  ;;  %v247_v35 = vld [vmem:[%s1066_s5 + $0x48] sm:$0xff]  ;;  %v241_v38 = vld [vmem:[%s1066_s5 + $0x18] sm:$0xff] }
  0x3c   : > { %292 = vmatpush.msra.mxu0 %v263_v12  ;;  %692 = vmatpush.msra.mxu2 %v263_v12  ;;  %v246_v33 = vld [vmem:[%s1066_s5 + $0x40] sm:$0xff]  ;;  %v249_v39 = vld [vmem:[%s1066_s5 + $0x58] sm:$0xff]  ;;  %v243_v42 = vld [vmem:[%s1066_s5 + $0x28] sm:$0xff] }
  0x3d   : > { %333 = vmatpush.msra.mxu1 %v279_v13  ;;  %708 = vmatpush.msra.mxu3 %v279_v13  ;;  %v242_v40 = vld [vmem:[%s1066_s5 + $0x20] sm:$0xff]  ;;  %v251_v43 = vld [vmem:[%s1066_s5 + $0x68] sm:$0xff]  ;;  %v244_v44 = vld [vmem:[%s1066_s5 + $0x30] sm:$0xff] }
  0x3e   : > { %293 = vmatpush.msra.mxu0 %v262_v14  ;;  %693 = vmatpush.msra.mxu2 %v262_v14  ;;  %v250_v41 = vld [vmem:[%s1066_s5 + $0x60] sm:$0xff]  ;;  %v252_v45 = vld [vmem:[%s1066_s5 + $0x70] sm:$0xff]  ;;  %v245_v46 = vld [vmem:[%s1066_s5 + $0x38] sm:$0xff] }
  0x3f   : > { %334 = vmatpush.msra.mxu1 %v278_v15  ;;  %709 = vmatpush.msra.mxu3 %v278_v15  ;;  %v253_v47 = vld [vmem:[%s1066_s5 + $0x78] sm:$0xff]  ;;  %v785_v9 = vpop.eup %784 }
  0x40   : > { %294 = vmatpush.msra.mxu0 %v261_v16  ;;  %694 = vmatpush.msra.mxu2 %v261_v16  ;;  %v385_v10 = vmul.f32 128.0, %v785_v9  ;;  %vm389_vm0 = vweird.f32 %v785_v9 }
  0x41   : > { %335 = vmatpush.msra.mxu1 %v277_v17  ;;  %710 = vmatpush.msra.mxu3 %v277_v17 }
  0x42   : > { %295 = vmatpush.msra.mxu0 %v260_v18  ;;  %695 = vmatpush.msra.mxu2 %v260_v18  ;;  %v386_v11 = vsub.f32 1.0, %v385_v10 }
  0x43   : > { %336 = vmatpush.msra.mxu1 %v276_v19  ;;  %711 = vmatpush.msra.mxu3 %v276_v19 }
  0x44   : > { %296 = vmatpush.msra.mxu0 %v259_v20  ;;  %696 = vmatpush.msra.mxu2 %v259_v20  ;;  %v387_v12 = vmul.f32 %v785_v9, %v386_v11 }
  0x45   : > { %337 = vmatpush.msra.mxu1 %v275_v21  ;;  %712 = vmatpush.msra.mxu3 %v275_v21 }
  0x46   : > { %297 = vmatpush.msra.mxu0 %v258_v22  ;;  %697 = vmatpush.msra.mxu2 %v258_v22  ;;  %v388_v13 = vadd.f32 %v785_v9, %v387_v12 }
  0x47   : > { %338 = vmatpush.msra.mxu1 %v274_v23  ;;  %713 = vmatpush.msra.mxu3 %v274_v23 }
  0x48   : > { %298 = vmatpush.msra.mxu0 %v257_v24  ;;  %698 = vmatpush.msra.mxu2 %v257_v24  ;;  %v1092_v14 = vsel %vm389_vm0, %v785_v9, %v388_v13 }
  0x49   : > { %339 = vmatpush.msra.mxu1 %v273_v25  ;;  %714 = vmatpush.msra.mxu3 %v273_v25 }
  0x4a   : > { %299 = vmatpush.msra.mxu0 %v256_v26  ;;  %699 = vmatpush.msra.mxu2 %v256_v26 }
  0x4b   : > { %340 = vmatpush.msra.mxu1 %v272_v27  ;;  %715 = vmatpush.msra.mxu3 %v272_v27 }
  0x4c   : > { %300 = vmatpush.msra.mxu0 %v255_v28  ;;  %700 = vmatpush.msra.mxu2 %v255_v28 }
  0x4d   : > { %341 = vmatpush.msra.mxu1 %v271_v29  ;;  %716 = vmatpush.msra.mxu3 %v271_v29 }
  0x4e   : > { %301 = vmatpush.msra.mxu0 %v254_v30  ;;  %701 = vmatpush.msra.mxu2 %v254_v30 }
  0x4f   : > { %342 = vmatpush.msra.mxu1 %v270_v31  ;;  %717 = vmatpush.msra.mxu3 %v270_v31 }
  0x50   : > { %302 = vmatmul.f32.vlgmr.msra.gmra.mxu0 %v238_v32  ;;  %314 = vmatmul.f32.vlgmr.msra.gmra.mxu2 %v246_v33 }
  0x51   : > { %343 = vmatmul.f32.vlgmr.msra.gmra.mxu1 %v239_v34  ;;  %355 = vmatmul.f32.vlgmr.msra.gmra.mxu3 %v247_v35 }
  0x58   : > { %305 = vmatmul.f32.gmra.mxu0 %v240_v36  ;;  %317 = vmatmul.f32.gmra.mxu2 %v248_v37 }
  0x59   : > { %346 = vmatmul.f32.gmra.mxu1 %v241_v38  ;;  %358 = vmatmul.f32.gmra.mxu3 %v249_v39 }
  0x60   : > { %308 = vmatmul.f32.gmra.mxu0 %v242_v40  ;;  %320 = vmatmul.f32.gmra.mxu2 %v250_v41 }
  0x61   : > { %349 = vmatmul.f32.gmra.mxu1 %v243_v42  ;;  %361 = vmatmul.f32.gmra.mxu3 %v251_v43 }
  0x68   : > { %311 = vmatmul.f32.gmra.mxu0 %v244_v44  ;;  %323 = vmatmul.f32.gmra.mxu2 %v252_v45 }
  0x69   : > { %352 = vmatmul.f32.gmra.mxu1 %v245_v46  ;;  %364 = vmatmul.f32.gmra.mxu3 %v253_v47 }
  0xcd   : > { %v303_v48 = vpop.f32.mrf.mxu0 }
  0xce   : > { %v344_v49 = vpop.f32.mrf.mxu1 }
  0xcf   : > { %v345_v50 = vadd.f32 %v344_v49, %v303_v48 }
  0xd1   : > { %368 = vadd.xlane.f32.xlu0 %v345_v50 }
  0xd3   : > { %v315_v51 = vpop.f32.mrf.mxu2 }
  0xd4   : > { %v356_v52 = vpop.f32.mrf.mxu3 }
  0xd5   : > { %v357_v53 = vadd.f32 %v356_v52, %v315_v51  ;;  %v306_v54 = vpop.f32.mrf.mxu0 }
  0xd6   : > { %v347_v55 = vpop.f32.mrf.mxu1 }
  0xd7   : > { %v348_v56 = vadd.f32 %v347_v55, %v306_v54  ;;  %376 = vadd.xlane.f32.xlu2 %v357_v53 }
  0xd9   : > { %370 = vadd.xlane.f32.xlu0 %v348_v56 }
  0xdb   : > { %v318_v57 = vpop.f32.mrf.mxu2 }
  0xdc   : > { %v359_v58 = vpop.f32.mrf.mxu3 }
  0xdd   : > { %v360_v59 = vadd.f32 %v359_v58, %v318_v57  ;;  %v309_v60 = vpop.f32.mrf.mxu0 }
  0xde   : > { %v350_v61 = vpop.f32.mrf.mxu1 }
  0xdf   : > { %v351_v62 = vadd.f32 %v350_v61, %v309_v60  ;;  %378 = vadd.xlane.f32.xlu2 %v360_v59 }
  0xe1   : > { %372 = vadd.xlane.f32.xlu1 %v351_v62 }
  0xe3   : > { %v321_v63 = vpop.f32.mrf.mxu2 }
  0xe4   : > { %v362_v0 = vpop.f32.mrf.mxu3 }
  0xe5   : > { %v363_v1 = vadd.f32 %v362_v0, %v321_v63  ;;  %v312_v2 = vpop.f32.mrf.mxu0 }
  0xe6   : > { %v353_v3 = vpop.f32.mrf.mxu1 }
  0xe7   : > { %v354_v4 = vadd.f32 %v353_v3, %v312_v2  ;;  %380 = vadd.xlane.f32.xlu0 %v363_v1 }
  0xe9   : > { %374 = vadd.xlane.f32.xlu1 %v354_v4 }
  0xeb   : > { %v324_v5 = vpop.f32.mrf.mxu2 }
  0xec   : > { %v365_v6 = vpop.f32.mrf.mxu3 }
  0xed   : > { %v366_v7 = vadd.f32 %v365_v6, %v324_v5 }
  0xf1   : > { %382 = vadd.xlane.f32.xlu1 %v366_v7 }
 0x144   : > { %v369_v15 = vpop.xlane.xlu0 %368 }
 0x145   : > { %v391_v16 = vmul.f32 %v1092_v14, %v369_v15 }
 0x147   : > { %v1095_v17 = vsub.f32 %v345_v50, %v391_v16 }
 0x149   : > { %v407_v18 = vmul.f32 %v1095_v17, %v1095_v17 }
 0x14a   : > { %v377_v19 = vpop.xlane.xlu2 %376 }
 0x14b   : > { %v395_v20 = vmul.f32 %v1092_v14, %v377_v19  ;;  %415 = vadd.xlane.f32.xlu2 %v407_v18 }
 0x14c   : > { %v371_v21 = vpop.xlane.xlu0 %370 }
 0x14d   : > { %v1100_v22 = vsub.f32 %v357_v53, %v395_v20  ;;  %v392_v23 = vmul.f32 %v1092_v14, %v371_v21 }
 0x14f   : > { %v411_v24 = vmul.f32 %v1100_v22, %v1100_v22  ;;  %v1105_v25 = vsub.f32 %v348_v56, %v392_v23 }
 0x151   : > { %423 = vadd.xlane.f32.xlu0 %v411_v24  ;;  %v408_v30 = vmul.f32 %v1105_v25, %v1105_v25 }
 0x152   : > { %v379_v28 = vpop.xlane.xlu2 %378 }
 0x153   : > { %v396_v31 = vmul.f32 %v1092_v14, %v379_v28 }
 0x154   : > { %v373_v26 = vpop.xlane.xlu1 %372 }
 0x155   : > { %v393_v27 = vmul.f32 %v1092_v14, %v373_v26  ;;  %v1115_v34 = vsub.f32 %v360_v59, %v396_v31 }
 0x157   : > { %v1108_v29 = vsub.f32 %v351_v62, %v393_v27  ;;  %v412_v39 = vmul.f32 %v1115_v34, %v1115_v34 }
 0x159   : > { %417 = vadd.xlane.f32.xlu0 %v408_v30  ;;  %v409_v32 = vmul.f32 %v1108_v29, %v1108_v29 }
 0x15a   : > { %v381_v36 = vpop.xlane.xlu0 %380 }
 0x15b   : > { %419 = vadd.xlane.f32.xlu1 %v409_v32  ;;  %v397_v38 = vmul.f32 %v1092_v14, %v381_v36 }
 0x15c   : > { %v375_v33 = vpop.xlane.xlu1 %374 }
 0x15d   : > { %v394_v35 = vmul.f32 %v1092_v14, %v375_v33  ;;  %v1125_v42 = vsub.f32 %v363_v1, %v397_v38 }
 0x15f   : > { %v1118_v37 = vsub.f32 %v354_v4, %v394_v35  ;;  %v413_v45 = vmul.f32 %v1125_v42, %v1125_v42  ;;  %v1141_v4 = vld [vmem:[%s1233_s2] ss:$0 sm:$0xff] }
 0x161   : > { %v410_v40 = vmul.f32 %v1118_v37, %v1118_v37 }
 0x163   : > { %425 = vadd.xlane.f32.xlu1 %v412_v39  ;;  %421 = vadd.xlane.f32.xlu2 %v410_v40 }
 0x164   : > { %v383_v41 = vpop.xlane.xlu1 %382 }
 0x165   : > { %v398_v43 = vmul.f32 %v1092_v14, %v383_v41 }
 0x167   : > { %v1128_v44 = vsub.f32 %v366_v7, %v398_v43  ;;  %v1147_v7 = vld [vmem:[%s1234_s3] ss:$0 sm:$0xff] }
 0x169   : > { %v414_v46 = vmul.f32 %v1128_v44, %v1128_v44 }
 0x16b   : > { %427 = vadd.xlane.f32.xlu2 %v413_v45  ;;  %429 = vadd.xlane.f32.xlu0 %v414_v46 }
 0x1be   : > { %v416_v47 = vpop.xlane.xlu2 %415 }
 0x1bf   : > { %v431_v48 = vmul.f32 %v416_v47, %v1092_v14 }
 0x1c1   : > { %v439_v49 = vadd.f32 1e-05, %v431_v48 }
 0x1c3   : > { %786 = vrsqrt.f32 %v439_v49  ;;  %vm453_vm2 = vweird.f32 %v439_v49 }
 0x1c4   : > { %v424_v50 = vpop.xlane.xlu0 %423 }
 0x1c5   : > { %v435_v51 = vmul.f32 %v424_v50, %v1092_v14 }
 0x1c7   : > { %v443_v52 = vadd.f32 1e-05, %v435_v51 }
 0x1c9   : > { %v787_v53 = vpop.eup %786  ;;  %788 = vrsqrt.f32 %v443_v52  ;;  %vm493_vm5 = vweird.f32 %v443_v52 }
 0x1ca   : > { %v448_v54 = vmul.f32 %v787_v53, %v439_v49  ;;  %vm454_vm1 = vweird.f32 %v787_v53 }
 0x1cb   : > { %vm455_vm3 = vmor %vm453_vm2, %vm454_vm1 }
 0x1cc   : > { %v449_v55 = vmul.f32 %v787_v53, %v448_v54  ;;  %v418_v56 = vpop.xlane.xlu0 %417 }
 0x1cd   : > { %v432_v57 = vmul.f32 %v418_v56, %v1092_v14 }
 0x1ce   : > { %v450_v58 = vmul.f32 0.5, %v449_v55  ;;  %v420_v59 = vpop.xlane.xlu1 %419 }
 0x1cf   : > { %v789_v60 = vpop.eup %788  ;;  %v440_v61 = vadd.f32 1e-05, %v432_v57  ;;  %v433_v62 = vmul.f32 %v420_v59, %v1092_v14 }
 0x1d0   : > { %v451_v63 = vsub.f32 1.5, %v450_v58  ;;  %v488_v0 = vmul.f32 %v789_v60, %v443_v52  ;;  %vm494_vm4 = vweird.f32 %v789_v60 }
 0x1d1   : > { %790 = vrsqrt.f32 %v440_v61  ;;  %v441_v1 = vadd.f32 1e-05, %v433_v62  ;;  %vm495_vm6 = vmor %vm493_vm5, %vm494_vm4  ;;  %vm463_vm8 = vweird.f32 %v440_v61 }
 0x1d2   : > { %v452_v2 = vmul.f32 %v787_v53, %v451_v63  ;;  %v489_v3 = vmul.f32 %v789_v60, %v488_v0 }
 0x1d3   : > { %792 = vrsqrt.f32 %v441_v1  ;;  %vm473_vm11 = vweird.f32 %v441_v1 }
 0x1d4   : > { %v456_v5 = vsel %vm455_vm3, %v787_v53, %v452_v2  ;;  %v490_v6 = vmul.f32 0.5, %v489_v3 }
 0x1d5   : > { %v527_v8 = vmul.f32 %v456_v5, %v1095_v17 }
 0x1d6   : > { %v491_v9 = vsub.f32 1.5, %v490_v6  ;;  %v422_v10 = vpop.xlane.xlu2 %421  ;;  %v426_v11 = vpop.xlane.xlu1 %425 }
 0x1d7   : > { %v791_v12 = vpop.eup %790  ;;  %v539_v13 = vmul.f32 %v1141_v4, %v527_v8  ;;  %v434_v15 = vmul.f32 %v422_v10, %v1092_v14  ;;  %v436_v16 = vmul.f32 %v426_v11, %v1092_v14 }
 0x1d8   : > { %v492_v18 = vmul.f32 %v789_v60, %v491_v9  ;;  %v458_v19 = vmul.f32 %v791_v12, %v440_v61  ;;  %vm464_vm7 = vweird.f32 %v791_v12 }
 0x1d9   : > { %v793_v20 = vpop.eup %792  ;;  %v551_v21 = vadd.f32 %v1147_v7, %v539_v13  ;;  %v442_v23 = vadd.f32 1e-05, %v434_v15  ;;  %v1154_v17 = vadd.f32 1e-05, %v436_v16  ;;  %vm465_vm10 = vmor %vm463_vm8, %vm464_vm7 }
 0x1da   : > { %v496_v24 = vsel %vm495_vm6, %v789_v60, %v492_v18  ;;  %v459_v26 = vmul.f32 %v791_v12, %v458_v19  ;;  %v468_v27 = vmul.f32 %v793_v20, %v441_v1  ;;  %vm474_vm9 = vweird.f32 %v793_v20 }
 0x1db   : > { %559 = vst [vmem:[%s1156_s28] sm:$0xff] %v551_v21  ;;  %v531_v28 = vmul.f32 %v496_v24, %v1100_v22  ;;  %794 = vrsqrt.f32 %v442_v23  ;;  %vm475_vm12 = vmor %vm473_vm11, %vm474_vm9  ;;  %vm483_vm15 = vweird.f32 %v442_v23  ;;  %vm503_vm1 = vweird.f32 %v1154_v17 }
 0x1dc   : > { %v460_v30 = vmul.f32 0.5, %v459_v26  ;;  %v469_v31 = vmul.f32 %v793_v20, %v468_v27  ;;  %796 = vrsqrt.f32 %v1154_v17 }
 0x1dd   : > { %v543_v32 = vmul.f32 %v1141_v4, %v531_v28 }
 0x1de   : > { %v461_v33 = vsub.f32 1.5, %v460_v30  ;;  %v470_v35 = vmul.f32 0.5, %v469_v31  ;;  %v428_v36 = vpop.xlane.xlu2 %427  ;;  %v430_v38 = vpop.xlane.xlu0 %429 }
 0x1df   : > { %v555_v39 = vadd.f32 %v1147_v7, %v543_v32  ;;  %v437_v40 = vmul.f32 %v428_v36, %v1092_v14  ;;  %v438_v41 = vmul.f32 %v430_v38, %v1092_v14 }
 0x1e0   : > { %v462_v22 = vmul.f32 %v791_v12, %v461_v33  ;;  %v471_v43 = vsub.f32 1.5, %v470_v35 }
 0x1e1   : > { %v795_v45 = vpop.eup %794  ;;  %563 = vst [vmem:[%s1156_s28 + $0x20] sm:$0xff] %v555_v39  ;;  %v445_v46 = vadd.f32 1e-05, %v437_v40  ;;  %v1166_v47 = vadd.f32 1e-05, %v438_v41 }
 0x1e2   : > { %v797_v48 = vpop.eup %796  ;;  %v466_v49 = vsel %vm465_vm10, %v791_v12, %v462_v22  ;;  %v472_v50 = vmul.f32 %v793_v20, %v471_v43  ;;  %v478_v51 = vmul.f32 %v795_v45, %v442_v23  ;;  %vm484_vm13 = vweird.f32 %v795_v45 }
 0x1e3   : > { %v528_v52 = vmul.f32 %v466_v49, %v1105_v25  ;;  %v498_v14 = vmul.f32 %v797_v48, %v1154_v17  ;;  %798 = vrsqrt.f32 %v445_v46  ;;  %vm504_vm14 = vweird.f32 %v797_v48  ;;  %vm485_vm0 = vmor %vm483_vm15, %vm484_vm13 }
 0x1e4   : > { %v476_v53 = vsel %vm475_vm12, %v793_v20, %v472_v50  ;;  %v479_v54 = vmul.f32 %v795_v45, %v478_v51  ;;  %800 = vrsqrt.f32 %v1166_v47  ;;  %vm505_vm2 = vmor %vm503_vm1, %vm504_vm14  ;;  %vm513_vm5 = vweird.f32 %v445_v46 }
 0x1e5   : > { %v540_v55 = vmul.f32 %v1141_v4, %v528_v52  ;;  %v529_v56 = vmul.f32 %v476_v53, %v1108_v29  ;;  %v499_v57 = vmul.f32 %v797_v48, %v498_v14  ;;  %vm523_vm7 = vweird.f32 %v1166_v47 }
 0x1e6   : > { %v480_v58 = vmul.f32 0.5, %v479_v54 }
 0x1e7   : > { %v552_v59 = vadd.f32 %v1147_v7, %v540_v55  ;;  %v541_v25 = vmul.f32 %v1141_v4, %v529_v56  ;;  %v500_v60 = vmul.f32 0.5, %v499_v57 }
 0x1e8   : > { %v481_v61 = vsub.f32 1.5, %v480_v58 }
 0x1e9   : > { %v799_v62 = vpop.eup %798  ;;  %560 = vst [vmem:[%s1156_s28 + $0x8] sm:$0xff] %v552_v59  ;;  %v553_v63 = vadd.f32 %v1147_v7, %v541_v25  ;;  %v501_v0 = vsub.f32 1.5, %v500_v60 }
 0x1ea   : > { %v801_v1 = vpop.eup %800  ;;  %v482_v2 = vmul.f32 %v795_v45, %v481_v61  ;;  %v508_v29 = vmul.f32 %v799_v62, %v445_v46  ;;  %vm514_vm3 = vweird.f32 %v799_v62 }
 0x1eb   : > { %561 = vst [vmem:[%s1156_s28 + $0x10] sm:$0xff] %v553_v63  ;;  %v502_v3 = vmul.f32 %v797_v48, %v501_v0  ;;  %v518_v5 = vmul.f32 %v801_v1, %v1166_v47  ;;  %vm524_vm4 = vweird.f32 %v801_v1  ;;  %vm515_vm6 = vmor %vm513_vm5, %vm514_vm3 }
 0x1ec   : > { %v486_v6 = vsel %vm485_vm0, %v795_v45, %v482_v2  ;;  %v509_v8 = vmul.f32 %v799_v62, %v508_v29  ;;  %vm525_vm8 = vmor %vm523_vm7, %vm524_vm4 }
 0x1ed   : > { %v530_v9 = vmul.f32 %v486_v6, %v1118_v37  ;;  %v506_v10 = vsel %vm505_vm2, %v797_v48, %v502_v3  ;;  %v519_v11 = vmul.f32 %v801_v1, %v518_v5 }
 0x1ee   : > { %v532_v12 = vmul.f32 %v506_v10, %v1115_v34  ;;  %v510_v13 = vmul.f32 0.5, %v509_v8 }
 0x1ef   : > { %v542_v15 = vmul.f32 %v1141_v4, %v530_v9  ;;  %v520_v16 = vmul.f32 0.5, %v519_v11 }
 0x1f0   : > { %v544_v18 = vmul.f32 %v1141_v4, %v532_v12  ;;  %v511_v19 = vsub.f32 1.5, %v510_v13 }
 0x1f1   : > { %v554_v20 = vadd.f32 %v1147_v7, %v542_v15  ;;  %v521_v21 = vsub.f32 1.5, %v520_v16 }
 0x1f2   : > { %v556_v37 = vadd.f32 %v1147_v7, %v544_v18  ;;  %v512_v23 = vmul.f32 %v799_v62, %v511_v19 }
 0x1f3   : > { %562 = vst [vmem:[%s1156_s28 + $0x18] sm:$0xff] %v554_v20  ;;  %v522_v34 = vmul.f32 %v801_v1, %v521_v21 }
 0x1f4   : > { %564 = vst [vmem:[%s1156_s28 + $0x28] sm:$0xff] %v556_v37  ;;  %v516_v17 = vsel %vm515_vm6, %v799_v62, %v512_v23 }
 0x1f5   : > { %v533_v24 = vmul.f32 %v516_v17, %v1125_v42  ;;  %v526_v26 = vsel %vm525_vm8, %v801_v1, %v522_v34 }
 0x1f6   : > { %v534_v27 = vmul.f32 %v526_v26, %v1128_v44 }
 0x1f7   : > { %v545_v28 = vmul.f32 %v1141_v4, %v533_v24 }
 0x1f8   : > { %v546_v30 = vmul.f32 %v1141_v4, %v534_v27 }
 0x1f9   : > { %v557_v31 = vadd.f32 %v1147_v7, %v545_v28 }
 0x1fa   : > { %v558_v32 = vadd.f32 %v1147_v7, %v546_v30 }
 0x1fb   : > { %565 = vst [vmem:[%s1156_s28 + $0x30] sm:$0xff] %v557_v31 }
 0x1fc   : > { %566 = vst [vmem:[%s1156_s28 + $0x38] sm:$0xff] %v558_v32 }
 0x1fd   : > { %889 = shalt.err (!%p886_p10)
}
 0x1fe   : > { %s940_s20 = smov 128   ;;  %s941_s25 = smov 8  }
 0x1ff   : > { %724 = dma.vmem_to_hbm [thread:$0]  (%p1034_p7), %s581_s19, 1024, %s583_s13, %s568_s10, %s940_s20, %s940_s20, %s941_s25  }
 0x200 PF: > { %s597_s27 = sand.u32 1, %s920_s15   ;;  %p1241_p12 = scmp.ge.s32.totalorder %s932_s18, 2 }
 0x201   : > { %s598_s28 = scalar_lea.sflag [#allocation4], %s597_s27 }
 0x202   : > { %p735_p13 = pnand %p1241_p12, %p1002_p6 }
 0x204   : > { %p736_p0 = pneg %p735_p13 }
 0x206   : > { %915 = dma.done.wait (%p736_p0), %s598_s28, 1024  }
 0x207   : > { %917 = vsyncadd (%p736_p0), %s598_s28, 4294966272  ;;  %p18_p3 = scmp.ge.s32.totalorder %s1020_s29, 4   ;;  %s1242_s15 = smov %s924_s16 }
 0x208   : > { %s1243_s16 = smov %s928_s17  ;;  %s1244_s17 = smov %s1030_s8 }
 0x209   : > { %s1245_s18 = smov %s1020_s29  ;;  %20 = sbr.rel (!%p18_p3) target bundleno = 6 (0x6), region = 85 }
 0x20e   :  { %604 = vsyncpa [#allocation3], 1 }
 0x20f   :  { %606 = vsyncpa [#allocation3 + $0x1], 1 }
 0x210   :  { %607 = vsyncpa [#allocation6], 1 }
 0x211   :  { %608 = vsyncpa [#allocation4], 1 }
 0x212   :  { %610 = vsyncpa [#allocation4 + $0x1], 1 }

</bundles_post_ra>
